<compile_context>
chip_gen: v6e
topology: v6e:2x2x1
jax: 0.10.0
libtpu: 0.0.40
codegen_flags: <defaults>
</compile_context>

<pallas_src>
import jax
import jax.numpy as jnp
from jax.experimental import pallas as pl
from jax.experimental.pallas import tpu as pltpu


def _round_up(n, m):
    return ((n + m - 1) // m) * m


def sinenet_kernel(x_ref, w1_ref, b1_ref, w2_ref, b2_ref, o_ref):
    # x_ref:  (1, Bt)   batch on lanes
    # w1_ref: (H, 1)    fc1 weight column
    # b1_ref: (H, 1)    fc1 bias column
    # w2_ref: (H, 1)    fc2 weight column
    # b2_ref: (1, 1)    fc2 bias scalar in SMEM
    x = x_ref[...]                                           # (1, Bt)
    # fc1 (K=1 matmul == outer product) + sigmoid, all on VPU/EUP:
    h = jax.nn.sigmoid(w1_ref[...] * x + b1_ref[...])        # (H, Bt)
    # fc2 (N=1 matmul == weighted row reduction) on VPU + XLU sublane-reduce:
    y = jnp.sum(h * w2_ref[...], axis=0, keepdims=True)      # (1, Bt)
    o_ref[...] = (y + b2_ref[0, 0]).astype(o_ref.dtype)


def sinenet_forward(x, w1, b1, w2, b2, *, block_b=2048):
    """SineNet forward.

    x:  (B, 1)  f32 input (PyTorch layout)
    w1: (H, 1)  fc1.weight (PyTorch convention: (out_features, in_features))
    b1: (H,)    fc1.bias
    w2: (1, H)  fc2.weight
    b2: (1,)    fc2.bias
    Returns (B, 1).
    """
    B = x.shape[0]
    H = w1.shape[0]

    # Lane-dense batch tile: at least 128 lanes, at most `block_b`.
    bt = min(block_b, _round_up(max(B, 1), 128))
    b_pad = _round_up(B, bt)

    # Transposed, padded input: batch on the lane axis.
    xt = jnp.zeros((1, b_pad), jnp.float32).at[0, :B].set(x[:, 0].astype(jnp.float32))

    w1c = w1.reshape(H, 1).astype(jnp.float32)
    b1c = b1.reshape(H, 1).astype(jnp.float32)
    w2c = w2.reshape(H, 1).astype(jnp.float32)   # (1,H) -> (H,1) column
    b2s = b2.reshape(1, 1).astype(jnp.float32)

    grid = (b_pad // bt,)

    out = pl.pallas_call(
        sinenet_kernel,
        out_shape=jax.ShapeDtypeStruct((1, b_pad), jnp.float32),
        grid=grid,
        in_specs=[
            pl.BlockSpec((1, bt), lambda i: (0, i)),          # x tile (lane-dense)
            pl.BlockSpec((H, 1), lambda i: (0, 0)),           # w1 (resident)
            pl.BlockSpec((H, 1), lambda i: (0, 0)),           # b1 (resident)
            pl.BlockSpec((H, 1), lambda i: (0, 0)),           # w2 (resident)
            pl.BlockSpec((1, 1), lambda i: (0, 0),
                         memory_space=pltpu.MemorySpace.SMEM),  # b2 scalar
        ],
        out_specs=pl.BlockSpec((1, bt), lambda i: (0, i)),
        compiler_params=pltpu.CompilerParams(
            dimension_semantics=("parallel",)),               # megacore on v7x
    )(xt, w1c, b1c, w2c, b2s)

    return out[0, :B].reshape(B, 1).astype(x.dtype)


def init_params(key, n_hidden):
    # Deterministic init mimicking PyTorch's default Linear init:
    # U(-1/sqrt(fan_in), 1/sqrt(fan_in)); PyTorch weight layout (out, in).
    k1, k2, k3, k4 = jax.random.split(key, 4)
    bound1 = 1.0                                  # fc1 fan_in = 1
    bound2 = 1.0 / jnp.sqrt(float(n_hidden))      # fc2 fan_in = n_hidden
    w1 = jax.random.uniform(k1, (n_hidden, 1), jnp.float32, -bound1, bound1)
    b1 = jax.random.uniform(k2, (n_hidden,), jnp.float32, -bound1, bound1)
    w2 = jax.random.uniform(k3, (1, n_hidden), jnp.float32, -bound2, bound2)
    b2 = jax.random.uniform(k4, (1,), jnp.float32, -bound2, bound2)
    return w1, b1, w2, b2


if __name__ == "__main__":
    key = jax.random.PRNGKey(0)
    kx, kp = jax.random.split(key)

    B, H = 8, 32
    # inputs in [-pi, pi], like a sine-regression toy dataset
    x = jax.random.uniform(kx, (B, 1), jnp.float32, -jnp.pi, jnp.pi)
    w1, b1, w2, b2 = init_params(kp, H)

    out = sinenet_forward(x, w1, b1, w2, b2)
    out = jax.block_until_ready(out)

    # reference check in plain JAX (PyTorch semantics: y = sigmoid(x@W1^T+b1)@W2^T+b2)
    ref = jax.nn.sigmoid(x @ w1.T + b1) @ w2.T + b2
    assert out.shape == (B, 1)
    assert jnp.allclose(out, ref, atol=1e-5, rtol=1e-5)

    print("KERNEL_OK")
</pallas_src>

<mosaic_0001>
module attributes {stable_mosaic.version = 11 : i64} {
  func.func @sinenet_kernel(%arg0: i32, %arg1: memref<1x128xf32, #tpu.memory_space<vmem>>, %arg2: memref<32x1xf32, #tpu.memory_space<vmem>>, %arg3: memref<32x1xf32, #tpu.memory_space<vmem>>, %arg4: memref<32x1xf32, #tpu.memory_space<vmem>>, %arg5: memref<1x1xf32, #tpu.memory_space<smem>>, %arg6: memref<1x128xf32, #tpu.memory_space<vmem>>) attributes {dimension_semantics = [#tpu.dimension_semantics<parallel>], iteration_bounds = array<i64: 1>, scalar_prefetch = 0 : i64, scratch_operands = 0 : i64, tpu.core_type = #tpu.core_type<tc>, window_params = [{transform_indices = @transform_0, window_bounds = array<i64: 1, 128>}, {pipeline_mode = #tpu.pipeline_mode<synchronous>, transform_indices = @transform_1, window_bounds = array<i64: 32, 1>}, {pipeline_mode = #tpu.pipeline_mode<synchronous>, transform_indices = @transform_2, window_bounds = array<i64: 32, 1>}, {pipeline_mode = #tpu.pipeline_mode<synchronous>, transform_indices = @transform_3, window_bounds = array<i64: 32, 1>}, {transform_indices = @transform_4, window_bounds = array<i64: 1, 1>}, {transform_indices = @transform_5, window_bounds = array<i64: 1, 128>}]} {
    %c0 = arith.constant 0 : index
    %c0_0 = arith.constant 0 : index
    %0 = vector.load %arg1[%c0, %c0_0] : memref<1x128xf32, #tpu.memory_space<vmem>>, vector<1x128xf32>
    %c0_1 = arith.constant 0 : index
    %c0_2 = arith.constant 0 : index
    %1 = vector.load %arg2[%c0_1, %c0_2] : memref<32x1xf32, #tpu.memory_space<vmem>>, vector<32x1xf32>
    %2 = vector.broadcast %1 : vector<32x1xf32> to vector<32x128xf32>
    %3 = vector.broadcast %0 : vector<1x128xf32> to vector<32x128xf32>
    %4 = arith.mulf %2, %3 : vector<32x128xf32>
    %c0_3 = arith.constant 0 : index
    %c0_4 = arith.constant 0 : index
    %5 = vector.load %arg3[%c0_3, %c0_4] : memref<32x1xf32, #tpu.memory_space<vmem>>, vector<32x1xf32>
    %6 = vector.broadcast %5 : vector<32x1xf32> to vector<32x128xf32>
    %7 = arith.addf %4, %6 : vector<32x128xf32>
    %8 = arith.negf %7 : vector<32x128xf32>
    %9 = math.exp %8 : vector<32x128xf32>
    %cst = arith.constant 1.000000e+00 : f32
    %10 = vector.broadcast %cst : f32 to vector<32x128xf32>
    %11 = arith.addf %10, %9 : vector<32x128xf32>
    %12 = arith.divf %10, %11 : vector<32x128xf32>
    %c0_5 = arith.constant 0 : index
    %c0_6 = arith.constant 0 : index
    %13 = vector.load %arg4[%c0_5, %c0_6] : memref<32x1xf32, #tpu.memory_space<vmem>>, vector<32x1xf32>
    %14 = vector.broadcast %13 : vector<32x1xf32> to vector<32x128xf32>
    %15 = arith.mulf %12, %14 : vector<32x128xf32>
    %cst_7 = arith.constant dense<0.000000e+00> : vector<128xf32>
    %16 = vector.multi_reduction <add>, %15, %cst_7 [0] : vector<32x128xf32> to vector<128xf32>
    %17 = vector.shape_cast %16 : vector<128xf32> to vector<1x128xf32>
    %c0_8 = arith.constant 0 : index
    %c0_9 = arith.constant 0 : index
    %18 = memref.load %arg5[%c0_8, %c0_9] : memref<1x1xf32, #tpu.memory_space<smem>>
    %19 = vector.broadcast %18 : f32 to vector<1x128xf32>
    %20 = arith.addf %17, %19 : vector<1x128xf32>
    %c0_10 = arith.constant 0 : index
    %c0_11 = arith.constant 0 : index
    %21 = vector.load %arg6[%c0_10, %c0_11] : memref<1x128xf32, #tpu.memory_space<vmem>>, vector<1x128xf32>
    tpu.vector_store %arg6[%c0_10, %c0_11], %20 {strides = array<i32>} : memref<1x128xf32, #tpu.memory_space<vmem>>, vector<1x128xf32>,
    return
  }
  func.func @transform_0(%arg0: i32) -> (i32, i32) {
    %c0_i32 = arith.constant 0 : i32
    %c0_i32_0 = arith.constant 0 : i32
    return %c0_i32, %arg0 : i32, i32
  }
  func.func @transform_1(%arg0: i32) -> (i32, i32) {
    %c0_i32 = arith.constant 0 : i32
    %c0_i32_0 = arith.constant 0 : i32
    %c0_i32_1 = arith.constant 0 : i32
    return %c0_i32, %c0_i32_0 : i32, i32
  }
  func.func @transform_2(%arg0: i32) -> (i32, i32) {
    %c0_i32 = arith.constant 0 : i32
    %c0_i32_0 = arith.constant 0 : i32
    %c0_i32_1 = arith.constant 0 : i32
    return %c0_i32, %c0_i32_0 : i32, i32
  }
  func.func @transform_3(%arg0: i32) -> (i32, i32) {
    %c0_i32 = arith.constant 0 : i32
    %c0_i32_0 = arith.constant 0 : i32
    %c0_i32_1 = arith.constant 0 : i32
    return %c0_i32, %c0_i32_0 : i32, i32
  }
  func.func @transform_4(%arg0: i32) -> (i32, i32) {
    %c0_i32 = arith.constant 0 : i32
    %c0_i32_0 = arith.constant 0 : i32
    %c0_i32_1 = arith.constant 0 : i32
    return %c0_i32, %c0_i32_0 : i32, i32
  }
  func.func @transform_5(%arg0: i32) -> (i32, i32) {
    %c0_i32 = arith.constant 0 : i32
    %c0_i32_0 = arith.constant 0 : i32
    return %c0_i32, %arg0 : i32, i32
  }
}

</mosaic_0001>

<bundles_post_ra>
// kernel: tpu_custom_call.1
= control target key start
LH: loop header
LB: loop body
LE: loop exit
PB: predicated region body
PF: predicated region fallthrough
CT: control target
= control target key end

     0   :  { %v211_v2 = vmov 0   ;;  %s288_s0 = inlined_call_operand.vmem [shape: f32[1,128], index: 0, kind: input, shape index: {}]   ;;  %s289_s1 = inlined_call_operand.vmem [shape: f32[32,1], index: 1, kind: input, shape index: {}]   ;;  %s290_s2 = inlined_call_operand.vmem [shape: f32[32,1], index: 2, kind: input, shape index: {}]   ;;  %s291_s3 = inlined_call_operand.vmem [shape: f32[32,1], index: 3, kind: input, shape index: {}]   ;;  %s292_s4 = inlined_call_operand.<no memory space> [shape: f32[1,1], index: 4, kind: input, shape index: {}]   ;;  %s293_s5 = inlined_call_operand.hbm [shape: f32[1,128], index: 5, kind: output, shape index: {}]  }
   0x1   :  { %v25_v0 = vld [vmem:[%s289_s1 + $0x10] sm:$0xff]  ;;  %v23_v1 = vld [vmem:[%s289_s1] sm:$0xff]  ;;  %172 = vset.pattern.permute.xlu1 %v211_v2  ;;  %171 = vset.pattern.permute.xlu0 %v211_v2  ;;  %v24_v4 = vld [vmem:[%s289_s1 + $0x8] sm:$0xff] }
   0x2   :  { %39 = vperm.xlu1 %172, %v25_v0   ;;  %29 = vperm.xlu0 %171, %v23_v1   ;;  %v57_v3 = vld [vmem:[%s290_s2] sm:$0xff] }
   0x3   :  { %11 = vsyncpa [#allocation4], 0  ;;  %v26_v5 = vld [vmem:[%s289_s1 + $0x18] sm:$0xff]  ;;  %v58_v6 = vld [vmem:[%s290_s2 + $0x8] sm:$0xff]  ;;  %v147_v62 = vstv %s292_s4  ;;  %s212_s17 = smov [#allocation3]  }
   0x4   :  { %v60_v7 = vld [vmem:[%s290_s2 + $0x18] sm:$0xff]  ;;  %v59_v8 = vld [vmem:[%s290_s2 + $0x10] sm:$0xff]  ;;  %v110_v9 = vld [vmem:[%s291_s3 + $0x8] sm:$0xff]  ;;  %s156_s18 = sshll.u32 %s212_s17, 4  ;;  %s157_s18 = int_to_ptr.vmem [resolvable:$true] %s156_s18 }
   0x5   :  { %v109_v10 = vld [vmem:[%s291_s3] sm:$0xff]  ;;  %v112_v11 = vld [vmem:[%s291_s3 + $0x18] sm:$0xff]  ;;  %v111_v12 = vld [vmem:[%s291_s3 + $0x10] sm:$0xff]  ;;  %s189_s19 = scalar_lea.vmem %s157_s18, 16  ;;  %s193_s20 = scalar_lea.vmem %s157_s18, 32 }
   0x6   :  { %63 = vperm.xlu1 %172, %v57_v3   ;;  %34 = vperm.xlu0 %171, %v24_v4   ;;  %v164_v14 = vld [vmem:[%s288_s0] ss:$0 sm:$0xff]  ;;  %p190_p0 = scmp.ne.s32.totalorder %s157_s18, %s189_s19  ;;  %p194_p1 = scmp.lt.s32.totalorder %s157_s18, %s157_s18 }
   0x7   :  { %p195_p2 = scmp.lt.s32.totalorder %s193_s20, %s189_s19 }
   0x9   :  { %p196_p3 = por %p195_p2, %p194_p1 }
   0xa   :  { %44 = vperm.xlu1 %172, %v26_v5   ;;  %68 = vperm.xlu0 %171, %v58_v6  }
   0xb   :  { %p197_p4 = pnand %p196_p3, %p190_p0 }
   0xe   :  { %78 = vperm.xlu1 %172, %v60_v7   ;;  %73 = vperm.xlu0 %171, %v59_v8  }
  0x12   :  { %120 = vperm.xlu1 %172, %v110_v9   ;;  %115 = vperm.xlu0 %171, %v109_v10  }
  0x16   :  { %130 = vperm.xlu1 %172, %v112_v11   ;;  %125 = vperm.xlu0 %171, %v111_v12  }
  0x7d   :  { %v40_v13 = vpop.permute.xlu1 %39  ;;  %v30_v15 = vpop.permute.xlu0 %29 }
  0x7e   :  { %v53_v16 = vmul.f32 %v164_v14, %v30_v15  ;;  %v55_v25 = vmul.f32 %v164_v14, %v40_v13 }
  0x81   :  { %v64_v17 = vpop.permute.xlu1 %63  ;;  %v35_v18 = vpop.permute.xlu0 %34 }
  0x82   :  { %v81_v19 = vadd.f32 %v64_v17, %v53_v16  ;;  %v54_v21 = vmul.f32 %v164_v14, %v35_v18 }
  0x84   :  { %v165_v20 = vmul.f32 -1.442695, %v81_v19 }
  0x85   :  { %v45_v22 = vpop.permute.xlu1 %44  ;;  %v69_v23 = vpop.permute.xlu0 %68 }
  0x86   :  { %v82_v24 = vadd.f32 %v69_v23, %v54_v21  ;;  %173 = vpow2.f32 %v165_v20  ;;  %v56_v26 = vmul.f32 %v164_v14, %v45_v22 }
  0x88   :  { %v166_v27 = vmul.f32 -1.442695, %v82_v24 }
  0x89   :  { %v79_v28 = vpop.permute.xlu1 %78  ;;  %v74_v29 = vpop.permute.xlu0 %73 }
  0x8a   :  { %175 = vpow2.f32 %v166_v27  ;;  %v84_v30 = vadd.f32 %v79_v28, %v56_v26  ;;  %v83_v31 = vadd.f32 %v74_v29, %v55_v25 }
  0x8c   :  { %v168_v32 = vmul.f32 -1.442695, %v84_v30  ;;  %v167_v33 = vmul.f32 -1.442695, %v83_v31 }
  0x8d   :  { %v116_v42 = vpop.permute.xlu0 %115  ;;  %v121_v45 = vpop.permute.xlu1 %120 }
  0x8e   :  { %177 = vpow2.f32 %v168_v32 }
  0x8f   :  { %179 = vpow2.f32 %v167_v33 }
  0x91   :  { %v126_v50 = vpop.permute.xlu0 %125  ;;  %v131_v53 = vpop.permute.xlu1 %130 }
  0x93   :  { %v174_v34 = vpop.eup %173 }
  0x94   :  { %v97_v36 = vadd.f32 1.0, %v174_v34 }
  0x97   :  { %v176_v35 = vpop.eup %175 }
  0x98   :  { %v98_v37 = vadd.f32 1.0, %v176_v35 }
  0x9a   :  { %181 = vrcp.f32 %v98_v37 }
  0x9b   :  { %v178_v38 = vpop.eup %177  ;;  %183 = vrcp.f32 %v97_v36 }
  0x9c   :  { %v180_v39 = vpop.eup %179  ;;  %v100_v40 = vadd.f32 1.0, %v178_v38 }
  0x9d   :  { %v99_v41 = vadd.f32 1.0, %v180_v39 }
  0x9e   :  { %185 = vrcp.f32 %v100_v40 }
  0x9f   :  { %187 = vrcp.f32 %v99_v41 }
  0xa7   :  { %v182_v43 = vpop.eup %181 }
  0xa8   :  { %v184_v44 = vpop.eup %183  ;;  %v134_v46 = vmul.f32 %v182_v43, %v121_v45 }
  0xa9   :  { %v133_v48 = vmul.f32 %v184_v44, %v116_v42 }
  0xab   :  { %v186_v47 = vpop.eup %185  ;;  %v137_v51 = vadd.f32 %v134_v46, %v133_v48 }
  0xac   :  { %v188_v49 = vpop.eup %187  ;;  %v136_v54 = vmul.f32 %v186_v47, %v131_v53 }
  0xad   :  { %v135_v52 = vmul.f32 %v188_v49, %v126_v50 }
  0xaf   :  { %v138_v55 = vadd.f32 %v137_v51, %v135_v52 }
  0xb1   :  { %v139_v56 = vadd.f32 %v138_v55, %v136_v54 }
  0xb3   :  { %v140_v57 = vrot.slane %v139_v56, 4 }
  0xb5   :  { %v141_v58 = vadd.f32 %v140_v57, %v139_v56 }
  0xb7   :  { %v142_v59 = vrot.slane %v141_v58, 2 }
  0xb9   :  { %v143_v60 = vadd.f32 %v142_v59, %v141_v58 }
  0xbb   :  { %v144_v61 = vrot.slane %v143_v60, 1 }
  0xbd   :  { %v145_v63 = vadd.f32 %v144_v61, %v143_v60 }
  0xbf   :  { %v148_v0 = vadd.f32 %v147_v62, %v145_v63 }
  0xc1   :  { %149 = vst [vmem:[#allocation3] sm:$0x1] %v148_v0 }
  0xc2   :  { %200 = shalt.err (!%p197_p4)
}
  0xc3   :  { %159 = dma.vmem_to_hbm [thread:$0]  %s157_s18, 16, %s293_s5, [#allocation4]  }
  0xc4   :  { %209 = dma.done.wait [#allocation4], 16  }
  0xc5   :  { %210 = vsyncadd [#allocation4], 4294967280 }
  0xc6   :  { %163 = vsyncpa [#allocation4], 1 }

</bundles_post_ra>
